<compile_context>
chip_gen: v6e
topology: v6e:2x2x1
jax: 0.10.0
libtpu: 0.0.40
codegen_flags: <defaults>
</compile_context>

<pallas_src>
import functools

import jax
import jax.numpy as jnp
from jax.experimental import pallas as pl
from jax.experimental.pallas import tpu as pltpu


def _last_layers_kernel(x_ref, w_ref, bias_ref, o_ref, acc_ref, *, nb, hw_total, block_hw):
    # x_ref:    (Nb, Cin, tHW)  input dtype (f32/bf16), Nb samples, one HW tile
    # w_ref:    (bCo, Cin)      bf16, 1x1 conv weight with BN scale pre-folded
    # bias_ref: (bCo, 1)        f32, folded BN bias = beta - mean * scale
    # o_ref:    (1, Nb, bCo)    f32, lane-dense pooled output block
    # acc_ref:  (Nb, bCo)       f32, running spatial sums (VMEM scratch)
    h = pl.program_id(2)
    nh = pl.num_programs(2)

    @pl.when(h == 0)
    def _():
        acc_ref[...] = jnp.zeros_like(acc_ref)

    w = w_ref[...]          # (bCo, Cin) bf16
    bias = bias_ref[...]    # (bCo, 1)   f32

    # Static loop: nb is a small compile-time constant (<= 8); amortizes per-step overhead.
    for b in range(nb):
        xb = x_ref[b].astype(jnp.bfloat16)                        # in-kernel bf16 cast (VPU)
        y = jnp.dot(w, xb, preferred_element_type=jnp.float32)    # (bCo, tHW) MXU, f32 acc
        y = y + bias                                              # folded BN bias
        y = jnp.clip(y, 0.0, 6.0)                                 # ReLU6
        if hw_total % block_hw != 0:
            # Only emitted when the last HW tile is partial; zero padded/garbage lanes
            # before the reduction (mask is all-true on non-last tiles).
            lane = jax.lax.broadcasted_iota(jnp.int32, y.shape, 1)
            y = jnp.where(h * block_hw + lane < hw_total, y, 0.0)
        acc_ref[b, :] = acc_ref[b, :] + jnp.sum(y, axis=1)        # spatial partial sum

    @pl.when(h == nh - 1)
    def _():
        # Single multiply by the static 1/HW; one lane-dense store per sample block.
        o_ref[0] = (acc_ref[...] * (1.0 / float(hw_total))).astype(o_ref.dtype)


def last_layers_forward(x_nchw, conv_w, bn_gamma, bn_beta, bn_mean, bn_var,
                        eps=1e-5, block_hw=None, nb=None):
    """x_nchw: (N, Cin, H, W); conv_w: (Cout, Cin, 1, 1) as in PyTorch.

    Returns (N, Cout, 1, 1) float32 (inference-mode BatchNorm).
    """
    N, Cin, H, W = x_nchw.shape
    Cout = conv_w.shape[0]
    HW = H * W

    # NCHW -> (N, Cin, HW) is a pure reshape of contiguous memory: no extra HBM pass.
    # Keep the producer dtype: the bf16 cast happens inside the kernel.
    x = x_nchw.reshape(N, Cin, HW)
    x_itemsize = jnp.dtype(x.dtype).itemsize

    # Fold inference BN into the conv weight (scale, in f32 before the bf16 cast) and a
    # per-channel bias.
    scale = bn_gamma.astype(jnp.float32) / jnp.sqrt(bn_var.astype(jnp.float32) + eps)
    bias = (bn_beta.astype(jnp.float32) - bn_mean.astype(jnp.float32) * scale).reshape(Cout, 1)
    w = (conv_w.reshape(Cout, Cin).astype(jnp.float32) * scale[:, None]).astype(jnp.bfloat16)

    # ---- tile selection -----------------------------------------------------
    BUF_BUDGET = 4 * 1024 * 1024  # target bytes per pipeline buffer of the x tile

    if block_hw is None:
        if Cin * HW * x_itemsize <= BUF_BUDGET:
            block_hw = HW                                        # whole-HW tile: no mask/acc loop
        else:
            block_hw = max(128, ((BUF_BUDGET // (Cin * x_itemsize)) // 128) * 128)
    block_hw = int(min(block_hw, HW))
    if block_hw != HW and block_hw % 128 != 0:                   # lane-dim constraint
        block_hw = min(HW, max(128, (block_hw // 128) * 128))
    n_hw = pl.cdiv(HW, block_hw)

    if nb is None:
        cap = max(1, BUF_BUDGET // max(1, Cin * block_hw * x_itemsize))
        cap = int(min(cap, 8, N))
        nb = max(d for d in range(1, cap + 1) if N % d == 0)     # exact sample blocks
    nb = int(nb)
    assert N % nb == 0, "nb must divide N"
    grid_n = N // nb

    # v7x: with a single sample block, split Cout across the two TensorCores (needs a
    # 128-multiple block). Harmless on v5e/v6e (single TC).
    n_co = 2 if (grid_n == 1 and Cout % 256 == 0) else 1
    block_co = Cout // n_co

    cost = pl.CostEstimate(
        flops=2 * N * HW * Cin * Cout,
        transcendentals=0,
        bytes_accessed=int(n_co * x.size * x_itemsize + w.size * 2
                           + bias.size * 4 + N * Cout * 4),
    )

    kernel = functools.partial(_last_layers_kernel, nb=nb, hw_total=HW, block_hw=block_hw)

    out = pl.pallas_call(
        kernel,
        out_shape=jax.ShapeDtypeStruct((grid_n, nb, Cout), jnp.float32),
        grid_spec=pltpu.PrefetchScalarGridSpec(
            num_scalar_prefetch=0,
            grid=(grid_n, n_co, n_hw),                           # HW reduction innermost
            in_specs=[
                pl.BlockSpec((nb, Cin, block_hw), lambda n, c, h: (n, 0, h)),  # x tile
                pl.BlockSpec((block_co, Cin), lambda n, c, h: (c, 0)),         # folded weight
                pl.BlockSpec((block_co, 1), lambda n, c, h: (c, 0)),           # folded bias
            ],
            out_specs=pl.BlockSpec((1, nb, block_co), lambda n, c, h: (n, 0, c)),
            scratch_shapes=[pltpu.VMEM((nb, block_co), jnp.float32)],
        ),
        compiler_params=pltpu.CompilerParams(
            dimension_semantics=("parallel", "parallel", "arbitrary"),
            # The 4 MiB x-buffer budget keeps the double-buffered footprint well under
            # this on every generation (v7x physical VMEM is 64 MiB).
            vmem_limit_bytes=32 * 1024 * 1024,
        ),
        cost_estimate=cost,
    )(x, w, bias)

    # (grid_n, nb, Cout) -> (N, Cout, 1, 1) to match nn.AdaptiveAvgPool2d((1, 1)) on NCHW.
    return out.reshape(N, Cout, 1, 1)


if __name__ == "__main__":
    key = jax.random.PRNGKey(0)
    k_x, k_w, k_g, k_b, k_m, k_v = jax.random.split(key, 6)
    eps = 1e-5

    def make_params(cin, cout):
        conv_w = jax.random.normal(k_w, (cout, cin, 1, 1), dtype=jnp.float32) * 0.1
        gamma = 1.0 + 0.1 * jax.random.normal(k_g, (cout,), dtype=jnp.float32)
        beta = 0.1 * jax.random.normal(k_b, (cout,), dtype=jnp.float32)
        mean = 0.05 * jax.random.normal(k_m, (cout,), dtype=jnp.float32)
        var = jnp.abs(1.0 + 0.1 * jax.random.normal(k_v, (cout,), dtype=jnp.float32))
        return conv_w, gamma, beta, mean, var

    def reference(x, conv_w, gamma, beta, mean, var):
        # Same numerics as the kernel: BN scale folded into the weight in f32, then bf16
        # operands with f32 accumulation; f32 epilogue.
        cout, cin = conv_w.shape[:2]
        s = gamma / jnp.sqrt(var + eps)
        b = beta - mean * s
        wf = (conv_w.reshape(cout, cin) * s[:, None]).astype(jnp.bfloat16).astype(jnp.float32)
        xb = x.astype(jnp.bfloat16).astype(jnp.float32)
        y = jnp.einsum("nchw,oc->nohw", xb, wf, precision=jax.lax.Precision.HIGHEST)
        y = y + b[None, :, None, None]
        y = jnp.clip(y, 0.0, 6.0)
        return jnp.mean(y, axis=(2, 3), keepdims=True)

    def check(out, ref):
        assert out.shape == ref.shape, (out.shape, ref.shape)
        err = float(jnp.max(jnp.abs(out - ref)))
        assert jnp.allclose(out, ref, atol=1e-4, rtol=1e-4), err

    # Config 1: small head, whole-HW tile, 2 samples fused into one grid step.
    N, Cin, Cout, H, W = 2, 4, 8, 16, 16
    params = make_params(Cin, Cout)
    x1 = jax.random.normal(k_x, (N, Cin, H, W), dtype=jnp.float32)
    out1 = last_layers_forward(x1, *params, eps=eps)
    jax.block_until_ready(out1)
    check(out1, reference(x1, *params))

    # Config 2: HW = 324 tiled into 128-wide blocks -> accumulator + partial-tile mask.
    x2 = jax.random.normal(k_x, (N, Cin, 18, 18), dtype=jnp.float32)
    out2 = last_layers_forward(x2, *params, eps=eps, block_hw=128)
    jax.block_until_ready(out2)
    check(out2, reference(x2, *params))

    # Config 3: multiple sample blocks (grid_n > 1).
    x3 = jax.random.normal(k_x, (4, Cin, H, W), dtype=jnp.float32)
    out3 = last_layers_forward(x3, *params, eps=eps, nb=2)
    jax.block_until_ready(out3)
    check(out3, reference(x3, *params))

    # Config 4: N == 1 with Cout % 256 == 0 -> Cout split across the parallel axis
    # (exercises the v7x two-TensorCore path; still valid on v5e/v6e).
    Cin4, Cout4 = 8, 256
    params4 = make_params(Cin4, Cout4)
    x4 = jax.random.normal(k_x, (1, Cin4, H, W), dtype=jnp.float32)
    out4 = last_layers_forward(x4, *params4, eps=eps)
    jax.block_until_ready(out4)
    check(out4, reference(x4, *params4))

    print("KERNEL_OK")
</pallas_src>

<mosaic_0001>
module attributes {stable_mosaic.version = 11 : i64} {
  func.func @_last_layers_kernel(%arg0: i32, %arg1: i32, %arg2: i32, %arg3: memref<2x4x256xf32, #tpu.memory_space<vmem>>, %arg4: memref<8x4xbf16, #tpu.memory_space<vmem>>, %arg5: memref<8x1xf32, #tpu.memory_space<vmem>>, %arg6: memref<1x2x8xf32, #tpu.memory_space<vmem>>, %arg7: memref<2x8xf32, #tpu.memory_space<vmem>>) attributes {dimension_semantics = [#tpu.dimension_semantics<parallel>, #tpu.dimension_semantics<parallel>, #tpu.dimension_semantics<arbitrary>], iteration_bounds = array<i64: 1, 1, 1>, scalar_prefetch = 0 : i64, scratch_operands = 1 : i64, tpu.core_type = #tpu.core_type<tc>, window_params = [{transform_indices = @transform_0, window_bounds = array<i64: 2, 4, 256>}, {transform_indices = @transform_1, window_bounds = array<i64: 8, 4>}, {transform_indices = @transform_2, window_bounds = array<i64: 8, 1>}, {transform_indices = @transform_3, window_bounds = array<i64: 1, 2, 8>}]} {
    %c0_i32 = arith.constant 0 : i32
    %0 = arith.cmpi eq, %arg2, %c0_i32 : i32
    %1 = arith.extui %0 : i1 to i32
    %c0_i32_0 = arith.constant 0 : i32
    %2 = arith.cmpi ne, %1, %c0_i32_0 : i32
    scf.if %2 {
      %cst_26 = arith.constant 0.000000e+00 : f32
      %42 = vector.broadcast %cst_26 : f32 to vector<2x8xf32>
      %c0_27 = arith.constant 0 : index
      %c0_28 = arith.constant 0 : index
      %43 = vector.load %arg7[%c0_27, %c0_28] : memref<2x8xf32, #tpu.memory_space<vmem>>, vector<2x8xf32>
      tpu.vector_store %arg7[%c0_27, %c0_28], %42 {strides = array<i32>} : memref<2x8xf32, #tpu.memory_space<vmem>>, vector<2x8xf32>,
    } else {
    }
    %c0 = arith.constant 0 : index
    %c0_1 = arith.constant 0 : index
    %3 = vector.load %arg4[%c0, %c0_1] : memref<8x4xbf16, #tpu.memory_space<vmem>>, vector<8x4xbf16>
    %c0_2 = arith.constant 0 : index
    %c0_3 = arith.constant 0 : index
    %4 = vector.load %arg5[%c0_2, %c0_3] : memref<8x1xf32, #tpu.memory_space<vmem>>, vector<8x1xf32>
    %c0_4 = arith.constant 0 : index
    %c0_5 = arith.constant 0 : index
    %c0_6 = arith.constant 0 : index
    %5 = vector.load %arg3[%c0_4, %c0_5, %c0_6] : memref<2x4x256xf32, #tpu.memory_space<vmem>>, vector<1x4x256xf32>
    %6 = vector.shape_cast %5 : vector<1x4x256xf32> to vector<4x256xf32>
    %7 = arith.truncf %6 : vector<4x256xf32> to vector<4x256xbf16>
    %cst = arith.constant dense<0.000000e+00> : vector<8x256xf32>
    %8 = tpu.matmul %3, %7, %cst {dimension_numbers = #tpu.dot_dimension_numbers<[1], [0], [0], [1], [0, 0, 1, 1], [], []>} : vector<8x4xbf16>, vector<4x256xbf16>, vector<8x256xf32> -> vector<8x256xf32>
    %9 = vector.broadcast %4 : vector<8x1xf32> to vector<8x256xf32>
    %10 = arith.addf %8, %9 : vector<8x256xf32>
    %cst_7 = arith.constant 0.000000e+00 : f32
    %cst_8 = arith.constant 6.000000e+00 : f32
    %11 = vector.broadcast %cst_7 : f32 to vector<8x256xf32>
    %12 = arith.maximumf %11, %10 : vector<8x256xf32>
    %13 = vector.broadcast %cst_8 : f32 to vector<8x256xf32>
    %14 = arith.minimumf %13, %12 : vector<8x256xf32>
    %c0_9 = arith.constant 0 : index
    %c0_10 = arith.constant 0 : index
    %15 = vector.load %arg7[%c0_9, %c0_10] : memref<2x8xf32, #tpu.memory_space<vmem>>, vector<1x8xf32>
    %16 = vector.shape_cast %15 : vector<1x8xf32> to vector<8xf32>
    %cst_11 = arith.constant dense<0.000000e+00> : vector<8xf32>
    %17 = vector.multi_reduction <add>, %14, %cst_11 [1] : vector<8x256xf32> to vector<8xf32>
    %18 = arith.addf %16, %17 : vector<8xf32>
    %c0_12 = arith.constant 0 : index
    %c0_13 = arith.constant 0 : index
    %19 = vector.load %arg7[%c0_12, %c0_13] : memref<2x8xf32, #tpu.memory_space<vmem>>, vector<1x8xf32>
    %20 = vector.shape_cast %19 : vector<1x8xf32> to vector<8xf32>
    %21 = vector.shape_cast %18 : vector<8xf32> to vector<1x8xf32>
    tpu.vector_store %arg7[%c0_12, %c0_13], %21 {strides = array<i32>} : memref<2x8xf32, #tpu.memory_space<vmem>>, vector<1x8xf32>,
    %c1 = arith.constant 1 : index
    %c0_14 = arith.constant 0 : index
    %c0_15 = arith.constant 0 : index
    %22 = vector.load %arg3[%c1, %c0_14, %c0_15] : memref<2x4x256xf32, #tpu.memory_space<vmem>>, vector<1x4x256xf32>
    %23 = vector.shape_cast %22 : vector<1x4x256xf32> to vector<4x256xf32>
    %24 = arith.truncf %23 : vector<4x256xf32> to vector<4x256xbf16>
    %cst_16 = arith.constant dense<0.000000e+00> : vector<8x256xf32>
    %25 = tpu.matmul %3, %24, %cst_16 {dimension_numbers = #tpu.dot_dimension_numbers<[1], [0], [0], [1], [0, 0, 1, 1], [], []>} : vector<8x4xbf16>, vector<4x256xbf16>, vector<8x256xf32> -> vector<8x256xf32>
    %26 = vector.broadcast %4 : vector<8x1xf32> to vector<8x256xf32>
    %27 = arith.addf %25, %26 : vector<8x256xf32>
    %cst_17 = arith.constant 0.000000e+00 : f32
    %cst_18 = arith.constant 6.000000e+00 : f32
    %28 = vector.broadcast %cst_17 : f32 to vector<8x256xf32>
    %29 = arith.maximumf %28, %27 : vector<8x256xf32>
    %30 = vector.broadcast %cst_18 : f32 to vector<8x256xf32>
    %31 = arith.minimumf %30, %29 : vector<8x256xf32>
    %c1_19 = arith.constant 1 : index
    %c0_20 = arith.constant 0 : index
    %32 = vector.load %arg7[%c1_19, %c0_20] : memref<2x8xf32, #tpu.memory_space<vmem>>, vector<1x8xf32>
    %33 = vector.shape_cast %32 : vector<1x8xf32> to vector<8xf32>
    %cst_21 = arith.constant dense<0.000000e+00> : vector<8xf32>
    %34 = vector.multi_reduction <add>, %31, %cst_21 [1] : vector<8x256xf32> to vector<8xf32>
    %35 = arith.addf %33, %34 : vector<8xf32>
    %c1_22 = arith.constant 1 : index
    %c0_23 = arith.constant 0 : index
    %36 = vector.load %arg7[%c1_22, %c0_23] : memref<2x8xf32, #tpu.memory_space<vmem>>, vector<1x8xf32>
    %37 = vector.shape_cast %36 : vector<1x8xf32> to vector<8xf32>
    %38 = vector.shape_cast %35 : vector<8xf32> to vector<1x8xf32>
    tpu.vector_store %arg7[%c1_22, %c0_23], %38 {strides = array<i32>} : memref<2x8xf32, #tpu.memory_space<vmem>>, vector<1x8xf32>,
    %c0_i32_24 = arith.constant 0 : i32
    %39 = arith.cmpi eq, %arg2, %c0_i32_24 : i32
    %40 = arith.extui %39 : i1 to i32
    %c0_i32_25 = arith.constant 0 : i32
    %41 = arith.cmpi ne, %40, %c0_i32_25 : i32
    scf.if %41 {
      %c0_26 = arith.constant 0 : index
      %c0_27 = arith.constant 0 : index
      %42 = vector.load %arg7[%c0_26, %c0_27] : memref<2x8xf32, #tpu.memory_space<vmem>>, vector<2x8xf32>
      %cst_28 = arith.constant 3.906250e-03 : f32
      %43 = vector.broadcast %cst_28 : f32 to vector<2x8xf32>
      %44 = arith.mulf %42, %43 : vector<2x8xf32>
      %c0_29 = arith.constant 0 : index
      %c0_30 = arith.constant 0 : index
      %c0_31 = arith.constant 0 : index
      %45 = vector.load %arg6[%c0_29, %c0_30, %c0_31] : memref<1x2x8xf32, #tpu.memory_space<vmem>>, vector<1x2x8xf32>
      %46 = vector.shape_cast %45 : vector<1x2x8xf32> to vector<2x8xf32>
      %47 = vector.shape_cast %44 : vector<2x8xf32> to vector<1x2x8xf32>
      tpu.vector_store %arg6[%c0_29, %c0_30, %c0_31], %47 {strides = array<i32>} : memref<1x2x8xf32, #tpu.memory_space<vmem>>, vector<1x2x8xf32>,
    } else {
    }
    return
  }
  func.func @transform_0(%arg0: i32, %arg1: i32, %arg2: i32) -> (i32, i32, i32) {
    %c0_i32 = arith.constant 0 : i32
    %c0_i32_0 = arith.constant 0 : i32
    return %arg0, %c0_i32, %arg2 : i32, i32, i32
  }
  func.func @transform_1(%arg0: i32, %arg1: i32, %arg2: i32) -> (i32, i32) {
    %c0_i32 = arith.constant 0 : i32
    %c0_i32_0 = arith.constant 0 : i32
    return %arg1, %c0_i32 : i32, i32
  }
  func.func @transform_2(%arg0: i32, %arg1: i32, %arg2: i32) -> (i32, i32) {
    %c0_i32 = arith.constant 0 : i32
    %c0_i32_0 = arith.constant 0 : i32
    return %arg1, %c0_i32 : i32, i32
  }
  func.func @transform_3(%arg0: i32, %arg1: i32, %arg2: i32) -> (i32, i32, i32) {
    %c0_i32 = arith.constant 0 : i32
    %c0_i32_0 = arith.constant 0 : i32
    return %arg0, %c0_i32, %arg1 : i32, i32, i32
  }
}

</mosaic_0001>

<bundles_post_ra>
// kernel: tpu_custom_call.1
= control target key start
LH: loop header
LB: loop body
LE: loop exit
PB: predicated region body
PF: predicated region fallthrough
CT: control target
= control target key end

     0   :  { %8 = vsyncpa [#allocation4], 0  ;;  %s309_s0 = inlined_call_operand.hbm [shape: f32[2,4,256], index: 0, kind: input, shape index: {}]   ;;  %s310_s1 = inlined_call_operand.vmem [shape: bf16[8,4], index: 1, kind: input, shape index: {}]   ;;  %s311_s2 = inlined_call_operand.vmem [shape: f32[8,1], index: 2, kind: input, shape index: {}]   ;;  %s312_s3 = inlined_call_operand.hbm [shape: f32[1,2,8], index: 3, kind: output, shape index: {}]  }
   0x1   :  { %9 = vsyncpa [#allocation5], 0  ;;  %s269_s12 = smov [#allocation3]  }
   0x2   :  { %s15_s13 = sshll.u32 %s269_s12, 4  ;;  %s16_s13 = int_to_ptr.vmem [resolvable:$true] %s15_s13 }
   0x3   :  { %s233_s14 = scalar_lea.vmem %s16_s13, 256  ;;  %p238_p1 = scmp.lt.s32.totalorder %s16_s13, %s16_s13 }
   0x4   :  { %p234_p0 = scmp.ne.s32.totalorder %s16_s13, %s233_s14  ;;  %p239_p2 = scmp.lt.s32.totalorder %s233_s14, %s233_s14 }
   0x6   :  { %p240_p3 = por %p239_p2, %p238_p1 }
   0x8   :  { %p241_p4 = pnand %p240_p3, %p234_p0 }
   0xa   :  { %244 = shalt.err (!%p241_p4)
}
   0xb   :  { %s270_s15 = smov 128   ;;  %s271_s16 = smov 8  }
   0xc   :  { %21 = dma.hbm_to_vmem [thread:$0]  %s309_s0, 256, %s16_s13, [#allocation4], %s270_s15, %s270_s15, %s271_s16  }
   0xd   :  { %265 = dma.done.wait [#allocation4], 256  }
   0xe   :  { %266 = vsyncadd [#allocation4], 4294967040  ;;  %v272_v0 = vmov 0   ;;  %v38_v1 = vld [vmem:[#allocation3] sm:$0xff]  ;;  %vm53_vm0 = vcmask 1041408   ;;  %v121_v2 = vld [vmem:[#allocation3 + $0x8] sm:$0xff]  ;;  %v110_v37 = vlaneseq }
   0xf   :  { %92 = vmatprep.mubr.bf16.mxu0 %v272_v0  ;;  %165 = vmatprep.mubr.bf16.mxu1 %v272_v0  ;;  %v40_v3 = vcombine.high %v38_v1, %v38_v1  ;;  %v123_v4 = vcombine.high %v121_v2, %v121_v2  ;;  %v42_v5 = vpack.c.bf16 %v38_v1, %v38_v1  ;;  %v37_v7 = vld [vmem:[%s311_s2] sm:$0xff]  ;;  %vm49_vm1 = vcmask 31744  }
  0x10   :  { %222 = vset.pattern.permute.xlu0 %v272_v0  ;;  %v125_v6 = vpack.c.bf16 %v121_v2, %v121_v2  ;;  %v36_v12 = vld [vmem:[%s310_s1] sm:$0xf]  ;;  %vm34_vm2 = vcmask 58368   ;;  %v273_v13 = vmov 0.0   ;;  %v111_v38 = vand.u32 127, %v110_v37  ;;  %s274_s1 = smov [#allocation6]  }
  0x11   :  { %46 = vperm.xlu0 %222, %v37_v7   ;;  %v43_v8 = vpack.c.bf16 %v40_v3, %v40_v3  ;;  %v126_v9 = vpack.c.bf16 %v123_v4, %v123_v4  ;;  %v55_v10 = vsel %vm53_vm0, %v42_v5, 0  ;;  %35 = vst.msk [vmem:[#allocation2] sm:$0x3] %vm34_vm2, %v273_v13  ;;  %v113_v39 = vshrl.u32 %v110_v37, 7  ;;  %s203_s2 = sshll.u32 %s274_s1, 4  ;;  %s204_s2 = int_to_ptr.vmem [resolvable:$true] %s203_s2 }
  0x12   :  { %v128_v11 = vsel %vm53_vm0, %v125_v6, 0  ;;  %vm118_vm3 = vcmask 57344   ;;  %s245_s22 = scalar_lea.vmem %s204_s2, 32  ;;  %p250_p6 = scmp.lt.s32.totalorder %s204_s2, %s204_s2 }
  0x13   :  { %212 = vmatprep.subr.msk.bf16.mxu0 %vm53_vm0, %v43_v8  ;;  %214 = vmatprep.subr.msk.bf16.mxu1 %vm53_vm0, %v126_v9  ;;  %v114_v40 = vsub.s32 %v111_v38, %v113_v39  ;;  %p246_p5 = scmp.ne.s32.totalorder %s204_s2, %s245_s22  ;;  %p251_p7 = scmp.lt.s32.totalorder %s245_s22, %s245_s22 }
  0x14   :  { %75 = vmatpush1.bf16.msra.mxu0 %v55_v10  ;;  %148 = vmatpush1.bf16.msra.mxu1 %v128_v11 }
  0x15   :  { %p252_p8 = por %p251_p7, %p250_p6 }
  0x17   :  { %213 = vmatmul.mubr.msk.bf16.vlgmr.msra.gmra.mxu0 %vm49_vm1, %v36_v12  ;;  %215 = vmatmul.mubr.msk.bf16.vlgmr.msra.gmra.mxu1 %vm49_vm1, %v36_v12  ;;  %p253_p9 = pnand %p252_p8, %p246_p5 }
  0x18   :  { %v178_v42 = vld [vmem:[#allocation2 + $0x1] sm:$0x1]  ;;  %v105_v44 = vld [vmem:[#allocation2] sm:$0x1] }
  0x8c   :  { %v47_v14 = vpop.permute.xlu0 %46 }
  0xd7   :  { %v94_v15 = vpop.f32.mrf.mxu0  ;;  %v167_v16 = vpop.f32.mrf.mxu1 }
  0xd8   :  { %v95_v17 = vadd.f32 %v94_v15, %v47_v14  ;;  %v168_v18 = vadd.f32 %v167_v16, %v47_v14 }
  0xd9   :  { %v96_v19 = vpop.f32.mrf.mxu0  ;;  %v169_v20 = vpop.f32.mrf.mxu1 }
  0xda   :  { %v101_v21 = vmax.f32 %v95_v17, 0.0  ;;  %v174_v22 = vmax.f32 %v168_v18, 0.0  ;;  %v97_v23 = vadd.f32 %v96_v19, %v47_v14  ;;  %v170_v24 = vadd.f32 %v169_v20, %v47_v14 }
  0xdb   :  { %v98_v25 = vpop.f32.mrf.mxu0  ;;  %v171_v26 = vpop.f32.mrf.mxu1 }
  0xdc   :  { %v102_v27 = vmax.f32 %v97_v23, 0.0  ;;  %v175_v28 = vmax.f32 %v170_v24, 0.0  ;;  %v103_v31 = vmin.f32 %v101_v21, 6.0  ;;  %v176_v32 = vmin.f32 %v174_v22, 6.0 }
  0xdd   :  { %v99_v29 = vpop.f32.mrf.mxu0  ;;  %v172_v30 = vpop.f32.mrf.mxu1 }
  0xde   :  { %v104_v33 = vmin.f32 %v102_v27, 6.0  ;;  %v177_v34 = vmin.f32 %v175_v28, 6.0 }
  0xe0   :  { %v179_v35 = vadd.f32 %v177_v34, %v176_v32  ;;  %v106_v36 = vadd.f32 %v104_v33, %v103_v31 }
  0xe2   :  { %180 = vadd.xlane.f32.xlu1 %v179_v35  ;;  %107 = vadd.xlane.f32.xlu0 %v106_v36 }
 0x16b   :  { %v181_v41 = vpop.xlane.xlu1 %180  ;;  %v108_v43 = vpop.xlane.xlu0 %107 }
 0x16c   :  { %v186_v45 = vrot.slane %v181_v41, %v114_v40  ;;  %v115_v46 = vrot.slane %v108_v43, %v114_v40 }
 0x16e   :  { %v188_v47 = vadd.f32 %v186_v45, %v178_v42  ;;  %v117_v48 = vadd.f32 %v115_v46, %v105_v44 }
 0x170   :  { %189 = vst.msk [vmem:[#allocation2 + $0x1] sm:$0x1] %vm118_vm3, %v188_v47  ;;  %119 = vst.msk [vmem:[#allocation2] sm:$0x1] %vm118_vm3, %v117_v48 }
 0x177   :  { %v193_v49 = vld [vmem:[#allocation2] sm:$0x3] }
 0x178   :  { %v194_v50 = vmul.f32 0.00390625, %v193_v49 }
 0x17a   :  { %196 = vst.msk [vmem:[#allocation6] sm:$0x3] %vm34_vm2, %v194_v50 }
 0x17b   :  { %256 = shalt.err (!%p253_p9)
}
 0x17c   :  { %206 = dma.vmem_to_hbm [thread:$0]  %s204_s2, 32, %s312_s3, [#allocation5]  }
 0x17d   :  { %267 = dma.done.wait [#allocation5], 32  }
 0x17e   :  { %268 = vsyncadd [#allocation5], 4294967264 }
 0x17f   :  { %210 = vsyncpa [#allocation4], 1 }
 0x180   :  { %211 = vsyncpa [#allocation5], 1 }

</bundles_post_ra>
